<compile_context>
chip_gen: v6e
topology: v6e:2x2x1
jax: 0.10.0
libtpu: 0.0.40
codegen_flags: <defaults>
</compile_context>

<pallas_src>
import jax
import jax.numpy as jnp
from jax.experimental import pallas as pl
from jax.experimental.pallas import tpu as pltpu


# --------------------------------------------------------------------------- #
# PE table (matches the PyTorch __init__ exactly, including the odd-exponent
# cosine divisor of the reference module -- intentionally not "fixed").
# --------------------------------------------------------------------------- #
def _build_pe(max_len: int, d_model: int) -> jnp.ndarray:
    pos = jnp.arange(max_len, dtype=jnp.float32)[:, None]              # [max_len, 1]
    even_idx = jnp.arange(0, d_model, 2, dtype=jnp.float32)            # sin exponents
    odd_idx = jnp.arange(1, d_model, 2, dtype=jnp.float32)             # cos exponents
    sin_part = jnp.sin(pos / jnp.power(10000.0, even_idx / d_model))
    cos_part = jnp.cos(pos / jnp.power(10000.0, odd_idx / d_model))
    pe = jnp.zeros((max_len, d_model), dtype=jnp.float32)
    pe = pe.at[:, 0::2].set(sin_part)
    pe = pe.at[:, 1::2].set(cos_part)
    return pe


# --------------------------------------------------------------------------- #
# Kernels
# --------------------------------------------------------------------------- #
def _pe_add_kernel_3d(x_ref, pe_ref, o_ref):
    # x_ref: (TBb, TS, D), pe_ref: (TS, D) -> broadcast add over the batch block.
    o_ref[...] = x_ref[...] + pe_ref[...]


def _pe_add_kernel_2d(x_ref, pe_ref, o_ref):
    # x_ref: (TB, TC), pe_ref: (1, TC) -> broadcast add over the row block.
    o_ref[...] = x_ref[...] + pe_ref[...]


# --------------------------------------------------------------------------- #
# Tiling helpers
# --------------------------------------------------------------------------- #
_TARGET_TILE_BYTES = 6 * 1024 * 1024   # per x/out block; safe across v5e/v6e/v7x
_VMEM_LIMIT_BYTES = 48 * 1024 * 1024   # < v7x's 64 MiB/TC; plenty on v5e/v6e
_MIN_SPLIT_BYTES = 1 * 1024 * 1024     # force >= 2 blocks above this (v7x megacore)


def _round_up(v: int, m: int) -> int:
    return ((v + m - 1) // m) * m


def _balanced_tile(extent: int, max_tile: int, mult: int):
    """Split `extent` into near-equal tiles of size <= ~max_tile.

    Returns (tile, num_tiles).  If a single tile covers the extent, returns the
    full extent (always a legal block dim).  Otherwise the tile is a multiple
    of `mult` (legal sublane/lane block dim; the ragged tail is masked).
    """
    if extent <= max_tile:
        return extent, 1
    n = pl.cdiv(extent, max_tile)
    tile = _round_up(pl.cdiv(extent, n), mult)
    return tile, pl.cdiv(extent, tile)


# --------------------------------------------------------------------------- #
# Forward
# --------------------------------------------------------------------------- #
def positional_encoding_forward(x: jnp.ndarray, pe: jnp.ndarray) -> jnp.ndarray:
    """x: [B, S, D]; pe: [max_len, D]. Returns x + pe[:S] (broadcast over batch)."""
    B, S, D = x.shape
    itemsize = x.dtype.itemsize
    total_bytes = B * S * D * itemsize
    pe_s = pe[:S].astype(x.dtype)   # f32 inputs: exact; bf16 inputs: see notes.

    compiler_params = pltpu.CompilerParams(
        # Pure elementwise / HBM-bound: both grid axes are independent, so let
        # v7x's megacore shard them across its two TensorCores.
        dimension_semantics=("parallel", "parallel"),
        vmem_limit_bytes=_VMEM_LIMIT_BYTES,
    )

    # ---------------- Path A: lane-friendly D -> keep the 3-D layout -------- #
    if D % 128 == 0:
        rows_budget = max(8, _TARGET_TILE_BYTES // (D * itemsize))
        TS, grid_s = _balanced_tile(S, rows_budget, 8)
        if grid_s == 1:
            # Whole sequence fits one block: tile the batch dim instead.
            batch_budget = max(1, _TARGET_TILE_BYTES // (S * D * itemsize))
            TBb, grid_b = _balanced_tile(B, batch_budget, 1)
        else:
            TBb, grid_b = 1, B

        # v7x megacore: guarantee >= 2 blocks for anything non-trivial.
        if grid_s * grid_b == 1 and total_bytes > _MIN_SPLIT_BYTES:
            if B > 1:
                TBb, grid_b = _balanced_tile(B, pl.cdiv(B, 2), 1)
            elif S > 8:
                TS, grid_s = _balanced_tile(S, _round_up(pl.cdiv(S, 2), 8), 8)

        return pl.pallas_call(
            _pe_add_kernel_3d,
            out_shape=jax.ShapeDtypeStruct((B, S, D), x.dtype),
            grid_spec=pltpu.PrefetchScalarGridSpec(
                num_scalar_prefetch=0,
                # S axis OUTER, batch axis INNER -> pe's block index is
                # unchanged across the inner loop, so its DMA is elided.
                grid=(grid_s, grid_b),
                in_specs=[
                    pl.BlockSpec((TBb, TS, D), lambda s, b: (b, s, 0)),
                    pl.BlockSpec((TS, D), lambda s, b: (s, 0)),
                ],
                out_specs=pl.BlockSpec((TBb, TS, D), lambda s, b: (b, s, 0)),
            ),
            compiler_params=compiler_params,
        )(x, pe_s)

    # ---------------- Path B: small / odd D -> lane-dense flatten ----------- #
    N = S * D
    x2 = x.reshape(B, N)
    pe_row = pe_s.reshape(1, N)

    MAX_TC = 512 * 128                                    # 65536 lanes per stripe
    TC, grid_c = _balanced_tile(N, MAX_TC, 128)           # balanced column tiles
    rows_budget = max(8, _TARGET_TILE_BYTES // (TC * itemsize))
    TB, grid_r = _balanced_tile(B, rows_budget, 8)

    # v7x megacore: guarantee >= 2 blocks for anything non-trivial.
    if grid_c * grid_r == 1 and total_bytes > _MIN_SPLIT_BYTES:
        if B > 8:
            TB, grid_r = _balanced_tile(B, _round_up(pl.cdiv(B, 2), 8), 8)
        elif N > 128:
            TC, grid_c = _balanced_tile(N, _round_up(pl.cdiv(N, 2), 128), 128)

    out2 = pl.pallas_call(
        _pe_add_kernel_2d,
        out_shape=jax.ShapeDtypeStruct((B, N), x.dtype),
        grid_spec=pltpu.PrefetchScalarGridSpec(
            num_scalar_prefetch=0,
            # Column axis OUTER, row axis INNER -> pe's block index invariant
            # across the inner loop (its repeated DMA is elided).
            grid=(grid_c, grid_r),
            in_specs=[
                pl.BlockSpec((TB, TC), lambda c, r: (r, c)),
                pl.BlockSpec((1, TC), lambda c, r: (0, c)),
            ],
            out_specs=pl.BlockSpec((TB, TC), lambda c, r: (r, c)),
        ),
        compiler_params=compiler_params,
    )(x2, pe_row)
    return out2.reshape(B, S, D)


# --------------------------------------------------------------------------- #
# Tests
# --------------------------------------------------------------------------- #
if __name__ == "__main__":
    key = jax.random.PRNGKey(0)

    # --- 1) Small test matching the module config (D=32 -> flattened path) ---
    max_len, d_model = 16, 32
    B, S = 2, 8
    x = jax.random.normal(key, (B, S, d_model), dtype=jnp.float32)
    pe = _build_pe(max_len, d_model)
    out = jax.block_until_ready(positional_encoding_forward(x, pe))
    ref = x + pe[:S]
    assert out.shape == (B, S, d_model)
    assert jnp.allclose(out, ref, atol=1e-6), "mismatch vs reference (small / flat path)"

    # --- 2) Lane-friendly D (D=512 -> layout-preserving 3-D path) ------------
    max_len2, d_model2 = 256, 512
    B2, S2 = 2, 160
    x2 = jax.random.normal(jax.random.PRNGKey(0), (B2, S2, d_model2), dtype=jnp.float32)
    pe2 = _build_pe(max_len2, d_model2)
    out2 = jax.block_until_ready(positional_encoding_forward(x2, pe2))
    ref2 = x2 + pe2[:S2]
    assert jnp.allclose(out2, ref2, atol=1e-6), "mismatch vs reference (3-D path)"

    # --- 3) 3-D path, >1 MiB with B=1 -> forced 2-way balanced S split + mask -
    max_len3, d_model3 = 640, 512
    B3, S3 = 1, 600
    x3 = jax.random.normal(jax.random.PRNGKey(0), (B3, S3, d_model3), dtype=jnp.float32)
    pe3 = _build_pe(max_len3, d_model3)
    out3 = jax.block_until_ready(positional_encoding_forward(x3, pe3))
    ref3 = x3 + pe3[:S3]
    assert jnp.allclose(out3, ref3, atol=1e-6), "mismatch vs reference (split S path)"

    # --- 4) Flattened path with balanced multi-column tiling (D=96) ----------
    max_len4, d_model4 = 1024, 96
    B4, S4 = 2, 1024
    x4 = jax.random.normal(jax.random.PRNGKey(0), (B4, S4, d_model4), dtype=jnp.float32)
    pe4 = _build_pe(max_len4, d_model4)
    out4 = jax.block_until_ready(positional_encoding_forward(x4, pe4))
    ref4 = x4 + pe4[:S4]
    assert jnp.allclose(out4, ref4, atol=1e-6), "mismatch vs reference (tiled flat path)"

    print("KERNEL_OK")
</pallas_src>

<mosaic_0001>
module attributes {stable_mosaic.version = 11 : i64} {
  func.func @_pe_add_kernel_2d(%arg0: i32, %arg1: i32, %arg2: memref<2x256xf32, #tpu.memory_space<vmem>>, %arg3: memref<1x256xf32, #tpu.memory_space<vmem>>, %arg4: memref<2x256xf32, #tpu.memory_space<vmem>>) attributes {dimension_semantics = [#tpu.dimension_semantics<parallel>, #tpu.dimension_semantics<parallel>], iteration_bounds = array<i64: 1, 1>, scalar_prefetch = 0 : i64, scratch_operands = 0 : i64, tpu.core_type = #tpu.core_type<tc>, window_params = [{transform_indices = @transform_0, window_bounds = array<i64: 2, 256>}, {transform_indices = @transform_1, window_bounds = array<i64: 1, 256>}, {transform_indices = @transform_2, window_bounds = array<i64: 2, 256>}]} {
    %c0 = arith.constant 0 : index
    %c0_0 = arith.constant 0 : index
    %0 = vector.load %arg2[%c0, %c0_0] : memref<2x256xf32, #tpu.memory_space<vmem>>, vector<2x256xf32>
    %c0_1 = arith.constant 0 : index
    %c0_2 = arith.constant 0 : index
    %1 = vector.load %arg3[%c0_1, %c0_2] : memref<1x256xf32, #tpu.memory_space<vmem>>, vector<1x256xf32>
    %2 = vector.broadcast %1 : vector<1x256xf32> to vector<2x256xf32>
    %3 = arith.addf %0, %2 : vector<2x256xf32>
    %c0_3 = arith.constant 0 : index
    %c0_4 = arith.constant 0 : index
    %4 = vector.load %arg4[%c0_3, %c0_4] : memref<2x256xf32, #tpu.memory_space<vmem>>, vector<2x256xf32>
    tpu.vector_store %arg4[%c0_3, %c0_4], %3 {strides = array<i32>} : memref<2x256xf32, #tpu.memory_space<vmem>>, vector<2x256xf32>,
    return
  }
  func.func @transform_0(%arg0: i32, %arg1: i32) -> (i32, i32) {
    %c0_i32 = arith.constant 0 : i32
    return %arg1, %arg0 : i32, i32
  }
  func.func @transform_1(%arg0: i32, %arg1: i32) -> (i32, i32) {
    %c0_i32 = arith.constant 0 : i32
    %c0_i32_0 = arith.constant 0 : i32
    return %c0_i32, %arg0 : i32, i32
  }
  func.func @transform_2(%arg0: i32, %arg1: i32) -> (i32, i32) {
    %c0_i32 = arith.constant 0 : i32
    return %arg1, %arg0 : i32, i32
  }
}

</mosaic_0001>

<bundles_post_ra>
// kernel: tpu_custom_call.1
= control target key start
LH: loop header
LB: loop body
LE: loop exit
PB: predicated region body
PF: predicated region fallthrough
CT: control target
= control target key end

     0   :  { %7 = vsyncpa [#allocation3], 0  ;;  %s172_s0 = inlined_call_operand.hbm [shape: f32[2,256], index: 0, kind: input, shape index: {}]   ;;  %s173_s1 = inlined_call_operand.hbm [shape: f32[1,256], index: 1, kind: input, shape index: {}]   ;;  %s174_s2 = inlined_call_operand.hbm [shape: f32[2,256], index: 2, kind: output, shape index: {}]  }
   0x1   :  { %8 = vsyncpa [#allocation6], 0 }
   0x2   :  { %9 = vsyncpa [#allocation4], 0  ;;  %s144_s9 = smov [#allocation2]   ;;  %s145_s11 = smov [#allocation5]  }
   0x3   :  { %s16_s10 = sshll.u32 %s144_s9, 4  ;;  %s26_s12 = sshll.u32 %s145_s11, 4  ;;  %s17_s10 = int_to_ptr.vmem [resolvable:$true] %s16_s10  ;;  %s27_s12 = int_to_ptr.vmem [resolvable:$true] %s26_s12 }
   0x4   :  { %s86_s13 = scalar_lea.vmem %s17_s10, 64  ;;  %p91_p1 = scmp.lt.s32.totalorder %s17_s10, %s17_s10 }
   0x5   :  { %p87_p0 = scmp.ne.s32.totalorder %s17_s10, %s86_s13  ;;  %p92_p2 = scmp.lt.s32.totalorder %s86_s13, %s86_s13 }
   0x7   :  { %p93_p3 = por %p92_p2, %p91_p1 }
   0x9   :  { %p94_p4 = pnand %p93_p3, %p87_p0 }
   0xb   :  { %97 = shalt.err (!%p94_p4)
}
   0xc   :  { %19 = dma.hbm_to_vmem [thread:$0]  %s172_s0, 64, %s17_s10, [#allocation3]  }
   0xd   :  { %s106_s16 = scalar_lea.vmem %s27_s12, 32  ;;  %p111_p6 = scmp.lt.s32.totalorder %s27_s12, %s27_s12 }
   0xe   :  { %p107_p5 = scmp.ne.s32.totalorder %s27_s12, %s106_s16  ;;  %p112_p7 = scmp.lt.s32.totalorder %s106_s16, %s106_s16 }
  0x10   :  { %p113_p8 = por %p112_p7, %p111_p6 }
  0x12   :  { %p114_p9 = pnand %p113_p8, %p107_p5 }
  0x14   :  { %117 = shalt.err (!%p114_p9)
}
  0x15   :  { %29 = dma.hbm_to_vmem [thread:$0]  %s173_s1, 32, %s27_s12, [#allocation6]  }
  0x16   :  { %138 = dma.done.wait [#allocation3], 64  }
  0x17   :  { %139 = vsyncadd [#allocation3], 4294967232 }
  0x18   :  { %140 = dma.done.wait [#allocation6], 32  }
  0x19   :  { %141 = vsyncadd [#allocation6], 4294967264  ;;  %v39_v0 = vlaneseq  ;;  %v146_v1 = vmov 1983009808   ;;  %v37_v7 = vld [vmem:[#allocation5] sm:$0x3] }
  0x1a   :  { %v49_v2 = vunpack.c.l.s4 %v146_v1  ;;  %v36_v12 = vld [vmem:[#allocation2] sm:$0xf]  ;;  %s147_s0 = smov [#allocation7]  }
  0x1b   :  { %v40_v3 = vshrl.u32 %v39_v0, 7  ;;  %s64_s19 = sshll.u32 %s147_s0, 4  ;;  %s65_s19 = int_to_ptr.vmem [resolvable:$true] %s64_s19 }
  0x1c   :  { %v50_v6 = vunpack.c.0.s8 %v49_v2  ;;  %s118_s1 = scalar_lea.vmem %s65_s19, 64  ;;  %p123_p11 = scmp.lt.s32.totalorder %s65_s19, %s65_s19 }
  0x1d   :  { %v41_v4 = vsub.s32 0, %v40_v3  ;;  %v45_v5 = vsub.s32 1, %v40_v3  ;;  %p119_p10 = scmp.ne.s32.totalorder %s65_s19, %s118_s1  ;;  %p124_p12 = scmp.lt.s32.totalorder %s118_s1, %s118_s1 }
  0x1e   :  { %v53_v10 = vsub.s32 %v50_v6, %v40_v3 }
  0x1f   :  { %v42_v8 = vrot.slane %v37_v7, %v41_v4  ;;  %v46_v9 = vrot.slane %v37_v7, %v45_v5  ;;  %p125_p13 = por %p124_p12, %p123_p11 }
  0x21   :  { %v47_v11 = vcombine.low %v42_v8, %v46_v9  ;;  %p126_p0 = pnand %p125_p13, %p119_p10 }
  0x23   :  { %v54_v13 = vrot.slane %v47_v11, %v53_v10 }
  0x25   :  { %v56_v14 = vadd.f32 %v54_v13, %v36_v12 }
  0x27   :  { %57 = vst [vmem:[#allocation7] sm:$0xf] %v56_v14 }
  0x28   :  { %129 = shalt.err (!%p126_p0)
}
  0x29   :  { %67 = dma.vmem_to_hbm [thread:$0]  %s65_s19, 64, %s174_s2, [#allocation4]  }
  0x2a   :  { %142 = dma.done.wait [#allocation4], 64  }
  0x2b   :  { %143 = vsyncadd [#allocation4], 4294967232 }
  0x2c   :  { %71 = vsyncpa [#allocation3], 1 }
  0x2d   :  { %72 = vsyncpa [#allocation6], 1 }
  0x2e   :  { %73 = vsyncpa [#allocation4], 1 }

</bundles_post_ra>
